<compile_context>
chip_gen: v7x
topology: tpu7x:2x2x1
jax: 0.10.0
libtpu: 0.0.40
codegen_flags: <defaults>
</compile_context>

<pallas_src>
import math
import functools

import numpy as np
import jax
import jax.numpy as jnp
from jax.experimental import pallas as pl
from jax.experimental.pallas import tpu as pltpu


def _cmta_kernel(x_ref, w1_ref, b1_ref, w2_ref, b2_ref, wq_ref, mt_ref, o_ref,
                 *, lout, tb):
    """One block of `tb` batch elements per grid step.

    Rows of x_ref are time-major inside the block: row r = t*tb + b, so the
    contiguous slice [t*tb:(t+1)*tb] holds time-step t for all tb batches.

    x_ref : (tb*lout, K*D)  im2col'd input windows (matmul dtype, e.g. bf16)
    w*_ref: (K*D, D)        fused conv weights
    b*_ref: (1, D)          conv bias (f32)
    wq_ref: (D, H)          query projection = target * head_one_hot / sqrt(D)
    mt_ref: (H, D)          head -> channel one-hot (transposed)
    o_ref : (tb, D)         per-batch attention output
    """
    xc = x_ref[...]

    def conv_elu(w_ref, b_ref):
        y = jnp.dot(xc, w_ref[...], preferred_element_type=jnp.float32)
        y = y + b_ref[...]
        # ELU(alpha=1): x if x > 0 else exp(x) - 1
        # (exp(min(y,0)) - 1 instead of expm1: <1e-7 difference near zero)
        return jnp.where(y > 0, y, jnp.exp(jnp.minimum(y, 0.0)) - 1.0)

    hk = conv_elu(w1_ref, b1_ref)        # (tb*lout, D)  keys
    hv = conv_elu(w2_ref, b2_ref)        # (tb*lout, D)  values

    # scores[r, h] = <hk[r, :], target restricted to head h> / sqrt(D)
    s = jnp.dot(hk, wq_ref[...], preferred_element_type=jnp.float32)  # (tb*lout, H)

    # per-batch max over the lout time steps (time-major rows -> static slices)
    m = s[0:tb, :]
    for t in range(1, lout):
        m = jnp.maximum(m, s[t * tb:(t + 1) * tb, :])

    # softmax numerators (broadcast the max back to every time step)
    e = jnp.exp(s - jnp.concatenate([m] * lout, axis=0))              # (tb*lout, H)
    # map per-head weights onto channels and weight the values
    g = jnp.dot(e, mt_ref[...], preferred_element_type=jnp.float32) * hv  # (tb*lout, D)

    # per-batch sums over the lout time steps
    den = e[0:tb, :]                      # (tb, H)
    num = g[0:tb, :]                      # (tb, D)
    for t in range(1, lout):
        den = den + e[t * tb:(t + 1) * tb, :]
        num = num + g[t * tb:(t + 1) * tb, :]

    den_full = jnp.dot(den, mt_ref[...], preferred_element_type=jnp.float32)  # (tb, D)
    o_ref[...] = (num * pl.reciprocal(den_full, approx=True)).astype(o_ref.dtype)


def cmta_forward(x_ncl, w1, b1, w2, b2, target, *, multihead_cnt=10,
                 block_b=8, matmul_dtype=jnp.bfloat16):
    """x_ncl: (B, D, L) NCL input; w*: (D_out, D_in, K) torch Conv1d weights;
    b*: (D,); target: (D, 1).  Returns (B, D, 1)."""
    B, D, L = x_ncl.shape
    K = w1.shape[-1]
    Lout = L - K + 1
    H = multihead_cnt
    dh = D // H

    TB = max(8, -(-int(block_b) // 8) * 8)     # sublane-aligned batch tile
    Bp = -(-B // TB) * TB                      # pad batch to a multiple of TB
    nb = Bp // TB

    # ---- layout plumbing (plain JAX glue, outside the kernel) ----
    x_cl = jnp.transpose(x_ncl, (0, 2, 1)).astype(jnp.float32)        # (B, L, D)
    x_cl = jnp.pad(x_cl, ((0, Bp - B), (0, 0), (0, 0)))
    # im2col: tap k of time-step t -> concatenated along the channel axis
    idx = jnp.arange(Lout)[:, None] + jnp.arange(K)[None, :]          # (Lout, K)
    x_win = x_cl[:, idx, :].reshape(Bp, Lout, K * D)                  # (Bp, Lout, K*D)
    # group batches into blocks of TB, time-major inside each block:
    # flat row = blk*(Lout*TB) + t*TB + b
    x_col = (x_win.reshape(nb, TB, Lout, K * D)
                  .transpose(0, 2, 1, 3)
                  .reshape(Bp * Lout, K * D)
                  .astype(matmul_dtype))

    # conv weights (D_out, D_in, K) -> (K*D_in, D_out), matching im2col order
    w1k = jnp.transpose(w1, (2, 1, 0)).reshape(K * D, D).astype(matmul_dtype)
    w2k = jnp.transpose(w2, (2, 1, 0)).reshape(K * D, D).astype(matmul_dtype)
    b1r = b1.reshape(1, D).astype(jnp.float32)
    b2r = b2.reshape(1, D).astype(jnp.float32)

    # fold target and 1/sqrt(D) into a (D, H) query projection; head one-hot
    mask = jax.nn.one_hot(jnp.arange(D) // dh, H, dtype=jnp.float32)  # (D, H)
    wq = (target.reshape(D, 1).astype(jnp.float32) * mask) / np.sqrt(D)
    mask_t = mask.T                                                   # (H, D)

    kernel = functools.partial(_cmta_kernel, lout=Lout, tb=TB)
    out = pl.pallas_call(
        kernel,
        out_shape=jax.ShapeDtypeStruct((Bp, D), jnp.float32),
        grid=(nb,),
        in_specs=[
            pl.BlockSpec((TB * Lout, K * D), lambda i: (i, 0)),  # x (per-block tile)
            pl.BlockSpec((K * D, D), lambda i: (0, 0)),          # w1 (resident)
            pl.BlockSpec((1, D), lambda i: (0, 0)),              # b1
            pl.BlockSpec((K * D, D), lambda i: (0, 0)),          # w2
            pl.BlockSpec((1, D), lambda i: (0, 0)),              # b2
            pl.BlockSpec((D, H), lambda i: (0, 0)),              # query projection
            pl.BlockSpec((H, D), lambda i: (0, 0)),              # head one-hot^T
        ],
        out_specs=pl.BlockSpec((TB, D), lambda i: (i, 0)),
        compiler_params=pltpu.CompilerParams(
            dimension_semantics=("parallel",)),
    )(x_col, w1k, b1r, w2k, b2r, wq, mask_t)

    return out[:B].reshape(B, D, 1)


def reference_forward(x, w1, b1, w2, b2, target, *, multihead_cnt=10):
    """Pure-JAX f32 reference mirroring the PyTorch module."""
    B, D, L = x.shape
    K = w1.shape[-1]
    Lout = L - K + 1
    H = multihead_cnt
    dh = D // H

    def conv(w, b):
        idx = jnp.arange(K)[:, None] + jnp.arange(Lout)[None, :]     # (K, Lout)
        xw = x[:, :, idx]                                            # (B, D, K, Lout)
        return jnp.einsum('bikt,oik->bot', xw, w) + b[None, :, None]

    elu = lambda z: jnp.where(z > 0, z, jnp.exp(jnp.minimum(z, 0.0)) - 1.0)
    h_k = elu(conv(w1, b1))                                          # (B, D, Lout)
    h_v = elu(conv(w2, b2))
    q = target.reshape(H, dh)
    k = h_k.reshape(B, H, dh, Lout)
    v = h_v.reshape(B, H, dh, Lout)
    s = jnp.einsum('hd,bhdt->bht', q, k) / np.sqrt(D)
    p = jax.nn.softmax(s, axis=-1)
    o = jnp.einsum('bht,bhdt->bhd', p, v)
    return o.reshape(B, D, 1)


if __name__ == "__main__":
    # small, module-consistent shapes: input_dim divisible by multihead_cnt=10
    B, D, L, K, H = 16, 40, 16, 3, 10

    key = jax.random.PRNGKey(0)
    kx, kw1, kb1, kw2, kb2, kt = jax.random.split(key, 6)

    # deterministic synthetic parameters (shapes per nn.Conv1d / nn.Parameter)
    xavier_std = math.sqrt(2.0 / (D * K + D * K))
    w1 = jax.random.normal(kw1, (D, D, K), jnp.float32) * xavier_std
    w2 = jax.random.normal(kw2, (D, D, K), jnp.float32) * xavier_std
    bbound = 1.0 / math.sqrt(D * K)
    b1 = jax.random.uniform(kb1, (D,), jnp.float32, -bbound, bbound)
    b2 = jax.random.uniform(kb2, (D,), jnp.float32, -bbound, bbound)
    target = jax.random.uniform(kt, (D, 1), jnp.float32, -1.0, 1.0)
    x = jax.random.normal(kx, (B, D, L), jnp.float32)

    # round matmul operands to bf16-representable values so the f32 reference
    # sees exactly what the bf16 MXU path sees
    x = x.astype(jnp.bfloat16).astype(jnp.float32)
    w1 = w1.astype(jnp.bfloat16).astype(jnp.float32)
    w2 = w2.astype(jnp.bfloat16).astype(jnp.float32)

    out = cmta_forward(x, w1, b1, w2, b2, target, multihead_cnt=H, block_b=8)
    out = jax.block_until_ready(out)

    ref = reference_forward(x, w1, b1, w2, b2, target, multihead_cnt=H)
    ref = jax.block_until_ready(ref)

    assert out.shape == (B, D, 1), out.shape
    np.testing.assert_allclose(np.asarray(out), np.asarray(ref),
                               rtol=1e-2, atol=1e-2)
    print("KERNEL_OK")
</pallas_src>

<mosaic_0001>
module attributes {stable_mosaic.version = 11 : i64} {
  func.func @_cmta_kernel(%arg0: i32, %arg1: memref<112x120xbf16, #tpu.memory_space<vmem>>, %arg2: memref<120x40xbf16, #tpu.memory_space<vmem>>, %arg3: memref<1x40xf32, #tpu.memory_space<vmem>>, %arg4: memref<120x40xbf16, #tpu.memory_space<vmem>>, %arg5: memref<1x40xf32, #tpu.memory_space<vmem>>, %arg6: memref<40x10xf32, #tpu.memory_space<vmem>>, %arg7: memref<10x40xf32, #tpu.memory_space<vmem>>, %arg8: memref<8x40xf32, #tpu.memory_space<vmem>>) attributes {dimension_semantics = [#tpu.dimension_semantics<parallel>], iteration_bounds = array<i64: 2>, scalar_prefetch = 0 : i64, scratch_operands = 0 : i64, tpu.core_type = #tpu.core_type<tc>, window_params = [{transform_indices = @transform_0, window_bounds = array<i64: 112, 120>}, {pipeline_mode = #tpu.pipeline_mode<synchronous>, transform_indices = @transform_1, window_bounds = array<i64: 120, 40>}, {pipeline_mode = #tpu.pipeline_mode<synchronous>, transform_indices = @transform_2, window_bounds = array<i64: 1, 40>}, {pipeline_mode = #tpu.pipeline_mode<synchronous>, transform_indices = @transform_3, window_bounds = array<i64: 120, 40>}, {pipeline_mode = #tpu.pipeline_mode<synchronous>, transform_indices = @transform_4, window_bounds = array<i64: 1, 40>}, {pipeline_mode = #tpu.pipeline_mode<synchronous>, transform_indices = @transform_5, window_bounds = array<i64: 40, 10>}, {pipeline_mode = #tpu.pipeline_mode<synchronous>, transform_indices = @transform_6, window_bounds = array<i64: 10, 40>}, {transform_indices = @transform_7, window_bounds = array<i64: 8, 40>}]} {
    %c0 = arith.constant 0 : index
    %c0_0 = arith.constant 0 : index
    %0 = vector.load %arg1[%c0, %c0_0] : memref<112x120xbf16, #tpu.memory_space<vmem>>, vector<112x120xbf16>
    %c0_1 = arith.constant 0 : index
    %c0_2 = arith.constant 0 : index
    %1 = vector.load %arg2[%c0_1, %c0_2] : memref<120x40xbf16, #tpu.memory_space<vmem>>, vector<120x40xbf16>
    %cst = arith.constant dense<0.000000e+00> : vector<112x40xf32>
    %2 = tpu.matmul %0, %1, %cst {dimension_numbers = #tpu.dot_dimension_numbers<[1], [0], [0], [1], [0, 0, 1, 1], [], []>} : vector<112x120xbf16>, vector<120x40xbf16>, vector<112x40xf32> -> vector<112x40xf32>
    %c0_3 = arith.constant 0 : index
    %c0_4 = arith.constant 0 : index
    %3 = vector.load %arg3[%c0_3, %c0_4] : memref<1x40xf32, #tpu.memory_space<vmem>>, vector<1x40xf32>
    %4 = vector.broadcast %3 : vector<1x40xf32> to vector<112x40xf32>
    %5 = arith.addf %2, %4 : vector<112x40xf32>
    %cst_5 = arith.constant 0.000000e+00 : f32
    %6 = vector.broadcast %cst_5 : f32 to vector<112x40xf32>
    %7 = arith.cmpf ogt, %5, %6 : vector<112x40xf32>
    %cst_6 = arith.constant 0.000000e+00 : f32
    %8 = vector.broadcast %cst_6 : f32 to vector<112x40xf32>
    %9 = arith.minimumf %5, %8 : vector<112x40xf32>
    %10 = math.exp %9 : vector<112x40xf32>
    %cst_7 = arith.constant 1.000000e+00 : f32
    %11 = vector.broadcast %cst_7 : f32 to vector<112x40xf32>
    %12 = arith.subf %10, %11 : vector<112x40xf32>
    %13 = arith.select %7, %5, %12 : vector<112x40xi1>, vector<112x40xf32>
    %c0_8 = arith.constant 0 : index
    %c0_9 = arith.constant 0 : index
    %14 = vector.load %arg4[%c0_8, %c0_9] : memref<120x40xbf16, #tpu.memory_space<vmem>>, vector<120x40xbf16>
    %cst_10 = arith.constant dense<0.000000e+00> : vector<112x40xf32>
    %15 = tpu.matmul %0, %14, %cst_10 {dimension_numbers = #tpu.dot_dimension_numbers<[1], [0], [0], [1], [0, 0, 1, 1], [], []>} : vector<112x120xbf16>, vector<120x40xbf16>, vector<112x40xf32> -> vector<112x40xf32>
    %c0_11 = arith.constant 0 : index
    %c0_12 = arith.constant 0 : index
    %16 = vector.load %arg5[%c0_11, %c0_12] : memref<1x40xf32, #tpu.memory_space<vmem>>, vector<1x40xf32>
    %17 = vector.broadcast %16 : vector<1x40xf32> to vector<112x40xf32>
    %18 = arith.addf %15, %17 : vector<112x40xf32>
    %cst_13 = arith.constant 0.000000e+00 : f32
    %19 = vector.broadcast %cst_13 : f32 to vector<112x40xf32>
    %20 = arith.cmpf ogt, %18, %19 : vector<112x40xf32>
    %cst_14 = arith.constant 0.000000e+00 : f32
    %21 = vector.broadcast %cst_14 : f32 to vector<112x40xf32>
    %22 = arith.minimumf %18, %21 : vector<112x40xf32>
    %23 = math.exp %22 : vector<112x40xf32>
    %cst_15 = arith.constant 1.000000e+00 : f32
    %24 = vector.broadcast %cst_15 : f32 to vector<112x40xf32>
    %25 = arith.subf %23, %24 : vector<112x40xf32>
    %26 = arith.select %20, %18, %25 : vector<112x40xi1>, vector<112x40xf32>
    %c0_16 = arith.constant 0 : index
    %c0_17 = arith.constant 0 : index
    %27 = vector.load %arg6[%c0_16, %c0_17] : memref<40x10xf32, #tpu.memory_space<vmem>>, vector<40x10xf32>
    %cst_18 = arith.constant dense<0.000000e+00> : vector<112x10xf32>
    %28 = tpu.matmul %13, %27, %cst_18 {dimension_numbers = #tpu.dot_dimension_numbers<[1], [0], [0], [1], [0, 0, 1, 1], [], []>} : vector<112x40xf32>, vector<40x10xf32>, vector<112x10xf32> -> vector<112x10xf32>
    %29 = vector.extract_strided_slice %28 {offsets = [0, 0], sizes = [8, 10], strides = [1, 1]} : vector<112x10xf32> to vector<8x10xf32>
    %30 = vector.extract_strided_slice %28 {offsets = [8, 0], sizes = [8, 10], strides = [1, 1]} : vector<112x10xf32> to vector<8x10xf32>
    %31 = arith.maximumf %29, %30 : vector<8x10xf32>
    %32 = vector.extract_strided_slice %28 {offsets = [16, 0], sizes = [8, 10], strides = [1, 1]} : vector<112x10xf32> to vector<8x10xf32>
    %33 = arith.maximumf %31, %32 : vector<8x10xf32>
    %34 = vector.extract_strided_slice %28 {offsets = [24, 0], sizes = [8, 10], strides = [1, 1]} : vector<112x10xf32> to vector<8x10xf32>
    %35 = arith.maximumf %33, %34 : vector<8x10xf32>
    %36 = vector.extract_strided_slice %28 {offsets = [32, 0], sizes = [8, 10], strides = [1, 1]} : vector<112x10xf32> to vector<8x10xf32>
    %37 = arith.maximumf %35, %36 : vector<8x10xf32>
    %38 = vector.extract_strided_slice %28 {offsets = [40, 0], sizes = [8, 10], strides = [1, 1]} : vector<112x10xf32> to vector<8x10xf32>
    %39 = arith.maximumf %37, %38 : vector<8x10xf32>
    %40 = vector.extract_strided_slice %28 {offsets = [48, 0], sizes = [8, 10], strides = [1, 1]} : vector<112x10xf32> to vector<8x10xf32>
    %41 = arith.maximumf %39, %40 : vector<8x10xf32>
    %42 = vector.extract_strided_slice %28 {offsets = [56, 0], sizes = [8, 10], strides = [1, 1]} : vector<112x10xf32> to vector<8x10xf32>
    %43 = arith.maximumf %41, %42 : vector<8x10xf32>
    %44 = vector.extract_strided_slice %28 {offsets = [64, 0], sizes = [8, 10], strides = [1, 1]} : vector<112x10xf32> to vector<8x10xf32>
    %45 = arith.maximumf %43, %44 : vector<8x10xf32>
    %46 = vector.extract_strided_slice %28 {offsets = [72, 0], sizes = [8, 10], strides = [1, 1]} : vector<112x10xf32> to vector<8x10xf32>
    %47 = arith.maximumf %45, %46 : vector<8x10xf32>
    %48 = vector.extract_strided_slice %28 {offsets = [80, 0], sizes = [8, 10], strides = [1, 1]} : vector<112x10xf32> to vector<8x10xf32>
    %49 = arith.maximumf %47, %48 : vector<8x10xf32>
    %50 = vector.extract_strided_slice %28 {offsets = [88, 0], sizes = [8, 10], strides = [1, 1]} : vector<112x10xf32> to vector<8x10xf32>
    %51 = arith.maximumf %49, %50 : vector<8x10xf32>
    %52 = vector.extract_strided_slice %28 {offsets = [96, 0], sizes = [8, 10], strides = [1, 1]} : vector<112x10xf32> to vector<8x10xf32>
    %53 = arith.maximumf %51, %52 : vector<8x10xf32>
    %54 = vector.extract_strided_slice %28 {offsets = [104, 0], sizes = [8, 10], strides = [1, 1]} : vector<112x10xf32> to vector<8x10xf32>
    %55 = arith.maximumf %53, %54 : vector<8x10xf32>
    %56 = tpu.concatenate %55, %55, %55, %55, %55, %55, %55, %55, %55, %55, %55, %55, %55, %55 in 0 : vector<8x10xf32>, vector<8x10xf32>, vector<8x10xf32>, vector<8x10xf32>, vector<8x10xf32>, vector<8x10xf32>, vector<8x10xf32>, vector<8x10xf32>, vector<8x10xf32>, vector<8x10xf32>, vector<8x10xf32>, vector<8x10xf32>, vector<8x10xf32>, vector<8x10xf32> -> vector<112x10xf32>
    %57 = arith.subf %28, %56 : vector<112x10xf32>
    %58 = math.exp %57 : vector<112x10xf32>
    %c0_19 = arith.constant 0 : index
    %c0_20 = arith.constant 0 : index
    %59 = vector.load %arg7[%c0_19, %c0_20] : memref<10x40xf32, #tpu.memory_space<vmem>>, vector<10x40xf32>
    %cst_21 = arith.constant dense<0.000000e+00> : vector<112x40xf32>
    %60 = tpu.matmul %58, %59, %cst_21 {dimension_numbers = #tpu.dot_dimension_numbers<[1], [0], [0], [1], [0, 0, 1, 1], [], []>} : vector<112x10xf32>, vector<10x40xf32>, vector<112x40xf32> -> vector<112x40xf32>
    %61 = arith.mulf %60, %26 : vector<112x40xf32>
    %62 = vector.extract_strided_slice %58 {offsets = [0, 0], sizes = [8, 10], strides = [1, 1]} : vector<112x10xf32> to vector<8x10xf32>
    %63 = vector.extract_strided_slice %61 {offsets = [0, 0], sizes = [8, 40], strides = [1, 1]} : vector<112x40xf32> to vector<8x40xf32>
    %64 = vector.extract_strided_slice %58 {offsets = [8, 0], sizes = [8, 10], strides = [1, 1]} : vector<112x10xf32> to vector<8x10xf32>
    %65 = arith.addf %62, %64 : vector<8x10xf32>
    %66 = vector.extract_strided_slice %61 {offsets = [8, 0], sizes = [8, 40], strides = [1, 1]} : vector<112x40xf32> to vector<8x40xf32>
    %67 = arith.addf %63, %66 : vector<8x40xf32>
    %68 = vector.extract_strided_slice %58 {offsets = [16, 0], sizes = [8, 10], strides = [1, 1]} : vector<112x10xf32> to vector<8x10xf32>
    %69 = arith.addf %65, %68 : vector<8x10xf32>
    %70 = vector.extract_strided_slice %61 {offsets = [16, 0], sizes = [8, 40], strides = [1, 1]} : vector<112x40xf32> to vector<8x40xf32>
    %71 = arith.addf %67, %70 : vector<8x40xf32>
    %72 = vector.extract_strided_slice %58 {offsets = [24, 0], sizes = [8, 10], strides = [1, 1]} : vector<112x10xf32> to vector<8x10xf32>
    %73 = arith.addf %69, %72 : vector<8x10xf32>
    %74 = vector.extract_strided_slice %61 {offsets = [24, 0], sizes = [8, 40], strides = [1, 1]} : vector<112x40xf32> to vector<8x40xf32>
    %75 = arith.addf %71, %74 : vector<8x40xf32>
    %76 = vector.extract_strided_slice %58 {offsets = [32, 0], sizes = [8, 10], strides = [1, 1]} : vector<112x10xf32> to vector<8x10xf32>
    %77 = arith.addf %73, %76 : vector<8x10xf32>
    %78 = vector.extract_strided_slice %61 {offsets = [32, 0], sizes = [8, 40], strides = [1, 1]} : vector<112x40xf32> to vector<8x40xf32>
    %79 = arith.addf %75, %78 : vector<8x40xf32>
    %80 = vector.extract_strided_slice %58 {offsets = [40, 0], sizes = [8, 10], strides = [1, 1]} : vector<112x10xf32> to vector<8x10xf32>
    %81 = arith.addf %77, %80 : vector<8x10xf32>
    %82 = vector.extract_strided_slice %61 {offsets = [40, 0], sizes = [8, 40], strides = [1, 1]} : vector<112x40xf32> to vector<8x40xf32>
    %83 = arith.addf %79, %82 : vector<8x40xf32>
    %84 = vector.extract_strided_slice %58 {offsets = [48, 0], sizes = [8, 10], strides = [1, 1]} : vector<112x10xf32> to vector<8x10xf32>
    %85 = arith.addf %81, %84 : vector<8x10xf32>
    %86 = vector.extract_strided_slice %61 {offsets = [48, 0], sizes = [8, 40], strides = [1, 1]} : vector<112x40xf32> to vector<8x40xf32>
    %87 = arith.addf %83, %86 : vector<8x40xf32>
    %88 = vector.extract_strided_slice %58 {offsets = [56, 0], sizes = [8, 10], strides = [1, 1]} : vector<112x10xf32> to vector<8x10xf32>
    %89 = arith.addf %85, %88 : vector<8x10xf32>
    %90 = vector.extract_strided_slice %61 {offsets = [56, 0], sizes = [8, 40], strides = [1, 1]} : vector<112x40xf32> to vector<8x40xf32>
    %91 = arith.addf %87, %90 : vector<8x40xf32>
    %92 = vector.extract_strided_slice %58 {offsets = [64, 0], sizes = [8, 10], strides = [1, 1]} : vector<112x10xf32> to vector<8x10xf32>
    %93 = arith.addf %89, %92 : vector<8x10xf32>
    %94 = vector.extract_strided_slice %61 {offsets = [64, 0], sizes = [8, 40], strides = [1, 1]} : vector<112x40xf32> to vector<8x40xf32>
    %95 = arith.addf %91, %94 : vector<8x40xf32>
    %96 = vector.extract_strided_slice %58 {offsets = [72, 0], sizes = [8, 10], strides = [1, 1]} : vector<112x10xf32> to vector<8x10xf32>
    %97 = arith.addf %93, %96 : vector<8x10xf32>
    %98 = vector.extract_strided_slice %61 {offsets = [72, 0], sizes = [8, 40], strides = [1, 1]} : vector<112x40xf32> to vector<8x40xf32>
    %99 = arith.addf %95, %98 : vector<8x40xf32>
    %100 = vector.extract_strided_slice %58 {offsets = [80, 0], sizes = [8, 10], strides = [1, 1]} : vector<112x10xf32> to vector<8x10xf32>
    %101 = arith.addf %97, %100 : vector<8x10xf32>
    %102 = vector.extract_strided_slice %61 {offsets = [80, 0], sizes = [8, 40], strides = [1, 1]} : vector<112x40xf32> to vector<8x40xf32>
    %103 = arith.addf %99, %102 : vector<8x40xf32>
    %104 = vector.extract_strided_slice %58 {offsets = [88, 0], sizes = [8, 10], strides = [1, 1]} : vector<112x10xf32> to vector<8x10xf32>
    %105 = arith.addf %101, %104 : vector<8x10xf32>
    %106 = vector.extract_strided_slice %61 {offsets = [88, 0], sizes = [8, 40], strides = [1, 1]} : vector<112x40xf32> to vector<8x40xf32>
    %107 = arith.addf %103, %106 : vector<8x40xf32>
    %108 = vector.extract_strided_slice %58 {offsets = [96, 0], sizes = [8, 10], strides = [1, 1]} : vector<112x10xf32> to vector<8x10xf32>
    %109 = arith.addf %105, %108 : vector<8x10xf32>
    %110 = vector.extract_strided_slice %61 {offsets = [96, 0], sizes = [8, 40], strides = [1, 1]} : vector<112x40xf32> to vector<8x40xf32>
    %111 = arith.addf %107, %110 : vector<8x40xf32>
    %112 = vector.extract_strided_slice %58 {offsets = [104, 0], sizes = [8, 10], strides = [1, 1]} : vector<112x10xf32> to vector<8x10xf32>
    %113 = arith.addf %109, %112 : vector<8x10xf32>
    %114 = vector.extract_strided_slice %61 {offsets = [104, 0], sizes = [8, 40], strides = [1, 1]} : vector<112x40xf32> to vector<8x40xf32>
    %115 = arith.addf %111, %114 : vector<8x40xf32>
    %c0_22 = arith.constant 0 : index
    %c0_23 = arith.constant 0 : index
    %116 = vector.load %arg7[%c0_22, %c0_23] : memref<10x40xf32, #tpu.memory_space<vmem>>, vector<10x40xf32>
    %cst_24 = arith.constant dense<0.000000e+00> : vector<8x40xf32>
    %117 = tpu.matmul %113, %116, %cst_24 {dimension_numbers = #tpu.dot_dimension_numbers<[1], [0], [0], [1], [0, 0, 1, 1], [], []>} : vector<8x10xf32>, vector<10x40xf32>, vector<8x40xf32> -> vector<8x40xf32>
    %118 = tpu.reciprocal %117 {approx = true} : vector<8x40xf32> -> vector<8x40xf32>
    %119 = arith.mulf %115, %118 : vector<8x40xf32>
    %c0_25 = arith.constant 0 : index
    %c0_26 = arith.constant 0 : index
    %120 = vector.load %arg8[%c0_25, %c0_26] : memref<8x40xf32, #tpu.memory_space<vmem>>, vector<8x40xf32>
    tpu.vector_store %arg8[%c0_25, %c0_26], %119 {strides = array<i32>} : memref<8x40xf32, #tpu.memory_space<vmem>>, vector<8x40xf32>,
    return
  }
  func.func @transform_0(%arg0: i32) -> (i32, i32) {
    %c0_i32 = arith.constant 0 : i32
    %c0_i32_0 = arith.constant 0 : i32
    return %arg0, %c0_i32 : i32, i32
  }
  func.func @transform_1(%arg0: i32) -> (i32, i32) {
    %c0_i32 = arith.constant 0 : i32
    %c0_i32_0 = arith.constant 0 : i32
    %c0_i32_1 = arith.constant 0 : i32
    return %c0_i32, %c0_i32_0 : i32, i32
  }
  func.func @transform_2(%arg0: i32) -> (i32, i32) {
    %c0_i32 = arith.constant 0 : i32
    %c0_i32_0 = arith.constant 0 : i32
    %c0_i32_1 = arith.constant 0 : i32
    return %c0_i32, %c0_i32_0 : i32, i32
  }
  func.func @transform_3(%arg0: i32) -> (i32, i32) {
    %c0_i32 = arith.constant 0 : i32
    %c0_i32_0 = arith.constant 0 : i32
    %c0_i32_1 = arith.constant 0 : i32
    return %c0_i32, %c0_i32_0 : i32, i32
  }
  func.func @transform_4(%arg0: i32) -> (i32, i32) {
    %c0_i32 = arith.constant 0 : i32
    %c0_i32_0 = arith.constant 0 : i32
    %c0_i32_1 = arith.constant 0 : i32
    return %c0_i32, %c0_i32_0 : i32, i32
  }
  func.func @transform_5(%arg0: i32) -> (i32, i32) {
    %c0_i32 = arith.constant 0 : i32
    %c0_i32_0 = arith.constant 0 : i32
    %c0_i32_1 = arith.constant 0 : i32
    return %c0_i32, %c0_i32_0 : i32, i32
  }
  func.func @transform_6(%arg0: i32) -> (i32, i32) {
    %c0_i32 = arith.constant 0 : i32
    %c0_i32_0 = arith.constant 0 : i32
    %c0_i32_1 = arith.constant 0 : i32
    return %c0_i32, %c0_i32_0 : i32, i32
  }
  func.func @transform_7(%arg0: i32) -> (i32, i32) {
    %c0_i32 = arith.constant 0 : i32
    %c0_i32_0 = arith.constant 0 : i32
    return %arg0, %c0_i32 : i32, i32
  }
}

</mosaic_0001>

<bundles_post_ra>
// kernel: tpu_custom_call.1
= control target key start
LH: loop header
LB: loop body
LE: loop exit
PB: predicated region body
PF: predicated region fallthrough
CT: control target
= control target key end

     0   :  { %12 = vsyncpa [#allocation3], 0  ;;  %s2461_s0 = inlined_call_operand.vmem [shape: bf16[224,120], index: 0, kind: input, shape index: {}]   ;;  %s2462_s1 = inlined_call_operand.vmem [shape: bf16[120,40], index: 1, kind: input, shape index: {}]   ;;  %s2463_s2 = inlined_call_operand.vmem [shape: f32[1,40], index: 2, kind: input, shape index: {}]   ;;  %s2464_s3 = inlined_call_operand.vmem [shape: bf16[120,40], index: 3, kind: input, shape index: {}]   ;;  %s2465_s4 = inlined_call_operand.vmem [shape: f32[1,40], index: 4, kind: input, shape index: {}]   ;;  %s2466_s5 = inlined_call_operand.vmem [shape: f32[40,10], index: 5, kind: input, shape index: {}]   ;;  %s2467_s6 = inlined_call_operand.vmem [shape: f32[10,40], index: 6, kind: input, shape index: {}]   ;;  %s2468_s7 = inlined_call_operand.hbm [shape: f32[16,40], index: 7, kind: output, shape index: {}]  }
   0x1   :  { %14 = vsyncpa [#allocation3 + $0x1], 0  ;;  %s2055_s24 = smov 0   ;;  %s2057_s25 = smov 0  }
   0x2   :  { %s2059_s26 = smov 0   ;;  %s2061_s27 = smov 0  }
   0x3 LB: > { %s2076_s28 = sadd.s32 4294967295, %s2008_s27   ;;  %s1449_s29 = sadd.s32 4294967294, %s2008_s27   ;;  %s2008_s27 = sphi %s2061_s27, %s2474_s27   ;;  %s2004_s26 = sphi %s2059_s26, %s2473_s26   ;;  %s2000_s25 = sphi %s2057_s25, %s2472_s25   ;;  %s1996_s24 = sphi %s2055_s24, %s2471_s24  }
   0x4   : > { %s2080_s30 = sadd.s32 1, %s2008_s27   ;;  %s179_s8 = sadd.s32 1, %s2004_s26 }
   0x5   : > { %s176_s9 = ssub.s32 %s2008_s27, %s2080_s30  ;;  %p189_p0 = scmp.ne.s32.totalorder %s2004_s26, %s2000_s25 }
   0x6   : > { %p177_p1 = scmp.eq.s32.totalorder %s176_s9, 0  ;;  %p190_p2 = scmp.eq.s32.totalorder %s2076_s28, 1 }
   0x7   : > { %p195_p3 = scmp.ne.s32.totalorder %s2000_s25, %s1996_s24  ;;  %p196_p4 = scmp.eq.s32.totalorder %s1449_s29, 1 }
   0x8   : > { %s2091_s10 = scalar_select %p177_p1, %s2004_s26, %s179_s8  }
   0x9   : > { %p2093_p5 = por %p190_p2, %p189_p0  ;;  %p2097_p6 = por %p196_p4, %p195_p3 }
   0xa   : > { %p1452_p7 = scmp.ge.s32.totalorder %s2008_s27, 1  ;;  %p241_p8 = scmp.lt.s32.totalorder %s2008_s27, 3 }
   0xc   : > { %p242_p9 = pnand %p1452_p7, %p241_p8 }
   0xd   : > { %v1837_v0 = vld [vmem:[%s2462_s1] sm:$0xff] (!%p242_p9)   ;;  %v2010_v1 = vmov (!%p242_p9), 0.0   ;;  %v1838_v2 = vld [vmem:[%s2462_s1 + $0x8] sm:$0xff] (!%p242_p9)   ;;  %vm2011_vm0 = vmmov (!%p242_p9), 0   ;;  %s273_s17 = smul.u32 (!%p242_p9), 14, %s2076_s28  ;;  %v1839_v3 = vld [vmem:[%s2462_s1 + $0x10] sm:$0xff] (!%p242_p9)  }
   0xe   : > { %245 = sbr.rel (%p242_p9) target bundleno = 827 (0x33b), region = 48  ;;  %1625 = vmatprep.subr.bf16.mxu0 (!%p242_p9), %v2010_v1  ;;  %1669 = vmatprep.subr.bf16.mxu1 (!%p242_p9), %v2010_v1  ;;  %v1840_v4 = vld [vmem:[%s2462_s1 + $0x18] sm:$0xff] (!%p242_p9)   ;;  %v1841_v5 = vld [vmem:[%s2462_s1 + $0x20] sm:$0xff] (!%p242_p9)   ;;  %v1842_v6 = vld [vmem:[%s2462_s1 + $0x28] sm:$0xff] (!%p242_p9)   ;;  %vm418_vm1 = vcmask (!%p242_p9), 1043456   ;;  %vm396_vm2 = vcmask (!%p242_p9), 982016  }
   0xf   : > { %1626 = vmatpush3.bf16.msra.mxu0 (!%p242_p9), %v1837_v0  ;;  %1641 = vmatprep.mubr.msk.bf16.mxu0 (!%p242_p9), %vm2011_vm0, %v2010_v1  ;;  %p274_p10 = scmp.lt.s32.totalorder (!%p242_p9), %s273_s17, 27  ;;  %v1843_v7 = vld [vmem:[%s2462_s1 + $0x30] sm:$0xff] (!%p242_p9)   ;;  %v1844_v8 = vld [vmem:[%s2462_s1 + $0x38] ss:$0 sps:$4 sm:$0xff] (!%p242_p9)   ;;  %v838_v9 = vld [vmem:[%s2466_s5] sm:$0xff] (!%p242_p9)  ;;  %vm843_vm3 = vcmask (!%p242_p9), 326656  }
  0x10   : > { %1627 = vmatprep.subr.bf16.mxu0 (!%p242_p9), %v2010_v1  ;;  %1685 = vmatprep.mubr.msk.bf16.mxu1 (!%p242_p9), %vm2011_vm0, %v2010_v1  ;;  %v839_v10 = vld [vmem:[%s2466_s5 + $0x8] sm:$0xff] (!%p242_p9)  ;;  %v420_v11 = vsel (!%p242_p9), %vm418_vm1, %v1844_v8, 0  ;;  %v840_v20 = vld [vmem:[%s2466_s5 + $0x10] sm:$0xff] (!%p242_p9)  ;;  %v841_v21 = vld [vmem:[%s2466_s5 + $0x18] sm:$0xff] (!%p242_p9)  ;;  %s270_s13 = sand.u32 (!%p242_p9), 1, %s2000_s25   ;;  %s1554_s15 = sshll.u32 (!%p242_p9), %s2076_s28, 7 }
  0x11   : > { %v1776_v12 = vpack.c.bf16 (!%p242_p9), %v839_v10, %v838_v9  ;;  %v1780_v22 = vpack.c.bf16 (!%p242_p9), %v841_v21, %v840_v20  ;;  %v842_v23 = vld [vmem:[%s2466_s5 + $0x20] sm:$0xff] (!%p242_p9)  ;;  %v1853_v25 = vld [vmem:[%s2464_s3 + $0x8] sm:$0xff] (!%p242_p9)   ;;  %v1854_v26 = vld [vmem:[%s2464_s3 + $0x10] sm:$0xff] (!%p242_p9)   ;;  %s1453_s14 = sshll.u32 (!%p242_p9), %s270_s13, 3  ;;  %s2418_s19 = scalar_lea.hbm (!%p242_p9), %s2468_s7, %s1554_s15 }
  0x12   : > { %v1852_v24 = vld [vmem:[%s2464_s3] sm:$0xff] (!%p242_p9)   ;;  %v1855_v27 = vld [vmem:[%s2464_s3 + $0x18] sm:$0xff] (!%p242_p9)   ;;  %v1857_v29 = vld [vmem:[%s2464_s3 + $0x28] sm:$0xff] (!%p242_p9)   ;;  %s272_s16 = scalar_lea.vmem (!%p242_p9), [#allocation2], %s1453_s14  ;;  %s1377_s20 = scalar_lea.sflag (!%p242_p9), [#allocation3], %s270_s13 }
  0x13   : > { %1628 = vmatpush3.bf16.msra.mxu0 (!%p242_p9), %v1838_v2  ;;  %1670 = vmatpush3.bf16.msra.mxu1 (!%p242_p9), %v1852_v24  ;;  %v1856_v28 = vld [vmem:[%s2464_s3 + $0x20] sm:$0xff] (!%p242_p9)   ;;  %v1858_v30 = vld [vmem:[%s2464_s3 + $0x30] sm:$0xff] (!%p242_p9)   ;;  %v1859_v31 = vld [vmem:[%s2464_s3 + $0x38] ss:$0 sps:$4 sm:$0xff] (!%p242_p9)   ;;  %s2014_s28 = smov (!%p242_p9), [#allocation2]  }
  0x14   : > { %1629 = vmatprep.subr.bf16.mxu0 (!%p242_p9), %v2010_v1  ;;  %1671 = vmatprep.subr.bf16.mxu1 (!%p242_p9), %v2010_v1  ;;  %v663_v32 = vsel (!%p242_p9), %vm418_vm1, %v1859_v31, 0  ;;  %v2238_v33 = vld [vmem:[%s2463_s2] ss:$0 sm:$0xff] (!%p242_p9) }
  0x15   : > { %s2476_s17 = smov (!%p274_p10, %s273_s17), 27 }
  0x16   : > { %s1454_s22 = sshll.u32 %s2476_s17, 2 }
  0x17   : > { %1630 = vmatpush3.bf16.msra.mxu0 %v1839_v3  ;;  %s2127_s8 = scalar_lea.vmem %s2461_s0, %s1454_s22  ;;  %1672 = vmatpush3.bf16.msra.mxu1 %v1853_v25  ;;  %s1950_s22 = sshll.u32 %s2014_s28, 4  ;;  %s1951_s22 = int_to_ptr.vmem [resolvable:$false] %s1950_s22 }
  0x18   : > { %1631 = vmatprep.subr.bf16.mxu0 %v2010_v1  ;;  %v1845_v13 = vld [vmem:[%s2127_s8] sm:$0xff]   ;;  %v1846_v14 = vld [vmem:[%s2127_s8 + $0x8] sm:$0xff]   ;;  %v1847_v15 = vld [vmem:[%s2127_s8 + $0x10] sm:$0xff]   ;;  %1673 = vmatprep.subr.bf16.mxu1 %v2010_v1  ;;  %s1952_s23 = scalar_lea.vmem %s1951_s22, 256 }
  0x19   : > { %v1848_v16 = vld [vmem:[%s2127_s8 + $0x18] sm:$0xff]   ;;  %v1849_v17 = vld [vmem:[%s2127_s8 + $0x20] sm:$0xff]   ;;  %v2174_v18 = vld [vmem:[%s2127_s8 + $0x28] sm:$0xff]  }
  0x1a   : > { %v2181_v19 = vld [vmem:[%s2127_s8 + $0x30] sm:$0xff]   ;;  %s1390_s8 = sshll.u32 %s272_s16, 4  ;;  %s2420_s8 = int_to_ptr.vmem [resolvable:$true] %s1390_s8 }
  0x1b   : > { %1632 = vmatpush3.bf16.msra.mxu0 %v1840_v4  ;;  %1674 = vmatpush3.bf16.msra.mxu1 %v1854_v26  ;;  %s1946_s21 = scalar_lea.vmem %s2420_s8, 128  ;;  %p1953_p0 = scmp.lt.s32.totalorder %s2420_s8, %s1951_s22 }
  0x1c   : > { %1633 = vmatprep.subr.bf16.mxu0 %v2010_v1  ;;  %1675 = vmatprep.subr.bf16.mxu1 %v2010_v1  ;;  %p1947_p11 = scmp.ne.s32.totalorder %s2420_s8, %s1946_s21  ;;  %p1954_p1 = scmp.lt.s32.totalorder %s1952_s23, %s1946_s21 }
  0x1e   : > { %p1948_p12 = pnand %p1947_p11, %p2093_p5  ;;  %p1955_p2 = por %p1954_p1, %p1953_p0 }
  0x1f   : > { %1634 = vmatpush3.bf16.msra.mxu0 %v1841_v5  ;;  %1676 = vmatpush3.bf16.msra.mxu1 %v1855_v27 }
  0x20   : > { %1635 = vmatprep.subr.bf16.mxu0 %v2010_v1  ;;  %1677 = vmatprep.subr.bf16.mxu1 %v2010_v1  ;;  %p1949_p13 = pneg %p1948_p12 }
  0x22   : > { %p1956_p3 = pnand %p1955_p2, %p1949_p13 }
  0x23   : > { %1636 = vmatpush3.bf16.msra.mxu0 %v1842_v6  ;;  %1678 = vmatpush3.bf16.msra.mxu1 %v1856_v28 }
  0x24   : > { %1637 = vmatprep.subr.bf16.mxu0 %v2010_v1  ;;  %1679 = vmatprep.subr.bf16.mxu1 %v2010_v1 }
  0x27   : > { %1638 = vmatpush3.bf16.msra.mxu0 %v1843_v7  ;;  %1680 = vmatpush3.bf16.msra.mxu1 %v1857_v29 }
  0x28   : > { %1639 = vmatprep.subr.bf16.mxu0 %v2010_v1  ;;  %1681 = vmatprep.subr.bf16.mxu1 %v2010_v1 }
  0x2b   : > { %1640 = vmatpush3.bf16.msra.mxu0 %v420_v11  ;;  %1682 = vmatpush3.bf16.msra.mxu1 %v1858_v30 }
  0x2c   : > { %1777 = vmatprep.subr.bf16.mxu0 %v1776_v12  ;;  %1683 = vmatprep.subr.bf16.mxu1 %v2010_v1 }
  0x2e   : > { %1642 = vmatmul.mubr.msk.bf16.vlgmr.msra.gmra.mrb[0].mxu0 %vm396_vm2, %v1845_v13 }
  0x2f   : > { %1645 = vmatprep.mubr.msk.bf16.mxu0 %vm2011_vm0, %v2010_v1  ;;  %1779 = vmatpush3.bf16.msra.mxu0 %v1776_v12 }
  0x30   : > { %1781 = vmatprep.subr.bf16.mxu0 %v1780_v22  ;;  %1684 = vmatpush3.bf16.msra.mxu1 %v663_v32 }
  0x33   : > { %1783 = vmatpush3.bf16.msra.mxu0 %v1780_v22  ;;  %1686 = vmatmul.mubr.msk.bf16.vlgmr.msra.gmra.mrb[0].mxu1 %vm396_vm2, %v1845_v13 }
  0x34   : > { %1721 = vmatprep.subr.mxu0 %v842_v23  ;;  %1689 = vmatprep.mubr.msk.bf16.mxu1 %vm2011_vm0, %v2010_v1 }
  0x36   : > { %1646 = vmatmul.mubr.msk.bf16.gmra.mrb[4].mxu0 %vm396_vm2, %v1846_v14 }
  0x37   : > { %1649 = vmatprep.mubr.msk.bf16.mxu0 %vm2011_vm0, %v2010_v1  ;;  %1722 = vmatpush3.msra.mxu0 %v842_v23 }
  0x3b   : > { %1690 = vmatmul.mubr.msk.bf16.gmra.mrb[4].mxu1 %vm396_vm2, %v1846_v14 }
  0x3c   : > { %1693 = vmatprep.mubr.msk.bf16.mxu1 %vm2011_vm0, %v2010_v1 }
  0x3e   : > { %1650 = vmatmul.mubr.msk.bf16.gmra.mrb[8].mxu0 %vm396_vm2, %v1847_v15 }
  0x3f   : > { %1653 = vmatprep.mubr.msk.bf16.mxu0 %vm2011_vm0, %v2010_v1 }
  0x43   : > { %1694 = vmatmul.mubr.msk.bf16.gmra.mrb[8].mxu1 %vm396_vm2, %v1847_v15 }
  0x44   : > { %1697 = vmatprep.mubr.msk.bf16.mxu1 %vm2011_vm0, %v2010_v1 }
  0x46   : > { %1654 = vmatmul.mubr.msk.bf16.gmra.mrb[12].mxu0 %vm396_vm2, %v1848_v16 }
  0x47   : > { %1657 = vmatprep.mubr.msk.bf16.mxu0 %vm2011_vm0, %v2010_v1 }
  0x4b   : > { %1698 = vmatmul.mubr.msk.bf16.gmra.mrb[12].mxu1 %vm396_vm2, %v1848_v16 }
  0x4c   : > { %1701 = vmatprep.mubr.msk.bf16.mxu1 %vm2011_vm0, %v2010_v1 }
  0x4e   : > { %1658 = vmatmul.mubr.msk.bf16.gmra.mrb[16].mxu0 %vm396_vm2, %v1849_v17 }
  0x4f   : > { %1661 = vmatprep.mubr.msk.bf16.mxu0 %vm2011_vm0, %v2010_v1 }
  0x53   : > { %1702 = vmatmul.mubr.msk.bf16.gmra.mrb[16].mxu1 %vm396_vm2, %v1849_v17 }
  0x54   : > { %1705 = vmatprep.mubr.msk.bf16.mxu1 %vm2011_vm0, %v2010_v1 }
  0x56   : > { %1662 = vmatmul.mubr.msk.bf16.gmra.mrb[20].mxu0 %vm396_vm2, %v2174_v18 }
  0x57   : > { %1665 = vmatprep.mubr.msk.bf16.mxu0 %vm2011_vm0, %v2010_v1 }
  0x5b   : > { %1706 = vmatmul.mubr.msk.bf16.gmra.mrb[20].mxu1 %vm396_vm2, %v2174_v18 }
  0x5c   : > { %1709 = vmatprep.mubr.msk.bf16.mxu1 %vm2011_vm0, %v2010_v1 }
  0x5e   : > { %1666 = vmatmul.mubr.msk.bf16.gmra.mrb[24].mxu0 %vm396_vm2, %v2181_v19 }
  0x63   : > { %1710 = vmatmul.mubr.msk.bf16.gmra.mrb[24].mxu1 %vm396_vm2, %v2181_v19 }
 0x101   : > { %v456_v34 = vpop.f32.mrb[0].mxu0 }
 0x102   : > { %v457_v35 = vadd.f32 %v2238_v33, %v456_v34  ;;  %v1643_v36 = vpop.f32.mrb[1].mxu0 }
 0x103   : > { %v459_v37 = vpop.f32.mrb[2].mxu0 }
 0x104   : > { %v525_v38 = vmin.f32 %v457_v35, 0.0  ;;  %v460_v39 = vadd.f32 %v2238_v33, %v459_v37  ;;  %v1644_v40 = vpop.f32.mrb[3].mxu0  ;;  %vm511_vm4 = vcmp.gt.f32.partialorder %v457_v35, 0.0 }
 0x106   : > { %v539_v41 = vmul.f32 1.442695, %v525_v38  ;;  %v526_v42 = vmin.f32 %v460_v39, 0.0  ;;  %vm512_vm5 = vcmp.gt.f32.partialorder %v460_v39, 0.0 }
 0x108   : > { %1860 = vpow2.f32 %v539_v41  ;;  %v541_v43 = vmul.f32 1.442695, %v526_v42 }
 0x109   : > { %v464_v44 = vpop.f32.mrb[4].mxu0 }
 0x10a   : > { %1862 = vpow2.f32 %v541_v43  ;;  %v465_v45 = vadd.f32 %v2238_v33, %v464_v44  ;;  %v1647_v46 = vpop.f32.mrb[5].mxu0 }
 0x10b   : > { %v467_v47 = vpop.f32.mrb[6].mxu0 }
 0x10c   : > { %v527_v48 = vmin.f32 %v465_v45, 0.0  ;;  %v468_v49 = vadd.f32 %v2238_v33, %v467_v47  ;;  %v1648_v50 = vpop.f32.mrb[7].mxu0  ;;  %vm513_vm6 = vcmp.gt.f32.partialorder %v465_v45, 0.0 }
 0x10e   : > { %v543_v51 = vmul.f32 1.442695, %v527_v48  ;;  %v528_v52 = vmin.f32 %v468_v49, 0.0  ;;  %vm514_vm7 = vcmp.gt.f32.partialorder %v468_v49, 0.0 }
 0x110   : > { %1864 = vpow2.f32 %v543_v51  ;;  %v545_v53 = vmul.f32 1.442695, %v528_v52 }
 0x111   : > { %v472_v54 = vpop.f32.mrb[8].mxu0 }
 0x112   : > { %v1861_v55 = vpop.eup %1860  ;;  %1866 = vpow2.f32 %v545_v53  ;;  %v473_v56 = vadd.f32 %v2238_v33, %v472_v54  ;;  %v1651_v57 = vpop.f32.mrb[9].mxu0 }
 0x113   : > { %v475_v58 = vpop.f32.mrb[10].mxu0  ;;  %v1478_v59 = vadd.f32 -1.0, %v1861_v55 }
 0x114   : > { %v1863_v60 = vpop.eup %1862  ;;  %v529_v61 = vmin.f32 %v473_v56, 0.0  ;;  %v476_v62 = vadd.f32 %v2238_v33, %v475_v58  ;;  %v1652_v63 = vpop.f32.mrb[11].mxu0  ;;  %vm515_vm8 = vcmp.gt.f32.partialorder %v473_v56, 0.0 }
 0x115   : > { %v1479_v0 = vadd.f32 -1.0, %v1863_v60  ;;  %v581_v2 = vsel %vm511_vm4, %v457_v35, %v1478_v59  ;;  %vm1121_vm4 = vcmask 1041408  }
 0x116   : > { %v547_v3 = vmul.f32 1.442695, %v529_v61  ;;  %v530_v4 = vmin.f32 %v476_v62, 0.0  ;;  %1723 = vmatprep.mubr.msk.f32.mxu0 %vm843_vm3, %v581_v2  ;;  %vm516_vm9 = vcmp.gt.f32.partialorder %v476_v62, 0.0 }
 0x117   : > { %v582_v5 = vsel %vm512_vm5, %v460_v39, %v1479_v0  ;;  %vm2012_vm5 = vmmov 1  }
 0x118   : > { %1868 = vpow2.f32 %v547_v3  ;;  %v549_v6 = vmul.f32 1.442695, %v530_v4  ;;  %1724 = vmatmul.mubr.msk.f32.vlgmr.msra.gmra.mrb[28].mxu0 %vm843_vm3, %v582_v5 }
 0x119   : > { %v480_v7 = vpop.f32.mrb[12].mxu0 }
 0x11a   : > { %v1865_v8 = vpop.eup %1864  ;;  %1870 = vpow2.f32 %v549_v6  ;;  %v481_v9 = vadd.f32 %v2238_v33, %v480_v7  ;;  %v1655_v10 = vpop.f32.mrb[13].mxu0 }
 0x11b   : > { %v483_v11 = vpop.f32.mrb[14].mxu0  ;;  %v1480_v12 = vadd.f32 -1.0, %v1865_v8 }
 0x11c   : > { %v1867_v13 = vpop.eup %1866  ;;  %v531_v14 = vmin.f32 %v481_v9, 0.0  ;;  %v484_v15 = vadd.f32 %v2238_v33, %v483_v11  ;;  %v1656_v16 = vpop.f32.mrb[15].mxu0  ;;  %vm517_vm10 = vcmp.gt.f32.partialorder %v481_v9, 0.0 }
 0x11d   : > { %v583_v17 = vsel %vm513_vm6, %v465_v45, %v1480_v12  ;;  %v1481_v18 = vadd.f32 -1.0, %v1867_v13  ;;  %vm1785_vm6 = vmpackc.low %vm1121_vm4, %vm2012_vm5 }
 0x11e   : > { %v551_v20 = vmul.f32 1.442695, %v531_v14  ;;  %v532_v21 = vmin.f32 %v484_v15, 0.0  ;;  %1726 = vmatprep.mubr.msk.f32.mxu0 %vm843_vm3, %v583_v17  ;;  %vm518_vm11 = vcmp.gt.f32.partialorder %v484_v15, 0.0 }
 0x11f   : > { %v584_v19 = vsel %vm514_vm7, %v468_v49, %v1481_v18 }
 0x120   : > { %1872 = vpow2.f32 %v551_v20  ;;  %v553_v22 = vmul.f32 1.442695, %v532_v21  ;;  %1727 = vmatmul.mubr.msk.f32.gmra.mrb[30].mxu0 %vm843_vm3, %v584_v19  ;;  %v1076_v21 = vld [vmem:[%s2467_s6] sm:$0xff]  ;;  %v1077_v19 = vld [vmem:[%s2467_s6 + $0x8] sm:$0x3] }
 0x121   : > { %v488_v23 = vpop.f32.mrb[16].mxu0 }
 0x122   : > { %v1869_v24 = vpop.eup %1868  ;;  %1874 = vpow2.f32 %v553_v22  ;;  %v489_v25 = vadd.f32 %v2238_v33, %v488_v23  ;;  %v1659_v26 = vpop.f32.mrb[17].mxu0  ;;  %v1784_v22 = vpack.c.bf16 %v1077_v19, %v1076_v21  ;;  %v2013_v23 = vmov 0.0|0.0  }
 0x123   : > { %v491_v27 = vpop.f32.mrb[18].mxu0  ;;  %v1482_v28 = vadd.f32 -1.0, %v1869_v24  ;;  %1790 = vmatprep.subr.bf16.mxu0 %v2013_v23  ;;  %v2288_v24 = vpop.f32.mrb[0].mxu1 }
 0x124   : > { %v1871_v29 = vpop.eup %1870  ;;  %v533_v30 = vmin.f32 %v489_v25, 0.0  ;;  %v492_v31 = vadd.f32 %v2238_v33, %v491_v27  ;;  %v1660_v32 = vpop.f32.mrb[19].mxu0  ;;  %vm519_vm12 = vcmp.gt.f32.partialorder %v489_v25, 0.0  ;;  %1786 = vmatprep.subr.msk.bf16.mxu1 %vm1785_vm6, %v1784_v22  ;;  %1793 = vmatpush3.bf16.msk.msra.mxu0 %vm1785_vm6, %v1784_v22 }
 0x125   : > { %v585_v34 = vsel %vm515_vm8, %v473_v56, %v1482_v28  ;;  %v1483_v35 = vadd.f32 -1.0, %v1871_v29  ;;  %1789 = vmatpush3.bf16.msk.msra.mxu1 %vm1785_vm6, %v1784_v22 }
 0x126   : > { %v555_v36 = vmul.f32 1.442695, %v533_v30  ;;  %v534_v37 = vmin.f32 %v492_v31, 0.0  ;;  %1729 = vmatprep.mubr.msk.f32.mxu0 %vm843_vm3, %v585_v34  ;;  %vm520_vm13 = vcmp.gt.f32.partialorder %v492_v31, 0.0 }
 0x127   : > { %v586_v38 = vsel %vm516_vm9, %v476_v62, %v1483_v35 }
 0x128   : > { %1876 = vpow2.f32 %v555_v36  ;;  %v557_v39 = vmul.f32 1.442695, %v534_v37  ;;  %1730 = vmatmul.mubr.msk.f32.gmra.mrb[32].mxu0 %vm843_vm3, %v586_v38 }
 0x129   : > { %v496_v40 = vpop.f32.mrb[20].mxu0 }
 0x12a   : > { %v1873_v41 = vpop.eup %1872  ;;  %1878 = vpow2.f32 %v557_v39  ;;  %v497_v42 = vadd.f32 %v2238_v33, %v496_v40  ;;  %v1663_v43 = vpop.f32.mrb[21].mxu0 }
 0x12b   : > { %v499_v44 = vpop.f32.mrb[22].mxu0  ;;  %v1484_v45 = vadd.f32 -1.0, %v1873_v41 }
 0x12c   : > { %v1875_v46 = vpop.eup %1874  ;;  %v535_v47 = vmin.f32 %v497_v42, 0.0  ;;  %v500_v48 = vadd.f32 %v2238_v33, %v499_v44  ;;  %v1664_v49 = vpop.f32.mrb[23].mxu0  ;;  %vm521_vm14 = vcmp.gt.f32.partialorder %v497_v42, 0.0 }
 0x12d   : > { %v587_v50 = vsel %vm517_vm10, %v481_v9, %v1484_v45  ;;  %v1485_v51 = vadd.f32 -1.0, %v1875_v46 }
 0x12e   : > { %v559_v52 = vmul.f32 1.442695, %v535_v47  ;;  %v536_v53 = vmin.f32 %v500_v48, 0.0  ;;  %1732 = vmatprep.mubr.msk.f32.mxu0 %vm843_vm3, %v587_v50  ;;  %vm522_vm15 = vcmp.gt.f32.partialorder %v500_v48, 0.0 }
 0x12f   : > { %v588_v54 = vsel %vm518_vm11, %v484_v15, %v1485_v51 }
 0x130   : > { %1880 = vpow2.f32 %v559_v52  ;;  %v561_v55 = vmul.f32 1.442695, %v536_v53  ;;  %1733 = vmatmul.mubr.msk.f32.gmra.mrb[34].mxu0 %vm843_vm3, %v588_v54 }
 0x131   : > { %v504_v56 = vpop.f32.mrb[24].mxu0 }
 0x132   : > { %v1877_v57 = vpop.eup %1876  ;;  %1882 = vpow2.f32 %v561_v55  ;;  %v505_v58 = vadd.f32 %v2238_v33, %v504_v56  ;;  %v1667_v59 = vpop.f32.mrb[25].mxu0 }
 0x133   : > { %v507_v60 = vpop.f32.mrb[26].mxu0  ;;  %v1486_v61 = vadd.f32 -1.0, %v1877_v57 }
 0x134   : > { %v1879_v62 = vpop.eup %1878  ;;  %v537_v63 = vmin.f32 %v505_v58, 0.0  ;;  %v508_v0 = vadd.f32 %v2238_v33, %v507_v60  ;;  %v1668_v2 = vpop.f32.mrb[27].mxu0  ;;  %vm523_vm1 = vcmp.gt.f32.partialorder %v505_v58, 0.0 }
 0x135   : > { %v589_v3 = vsel %vm519_vm12, %v489_v25, %v1486_v61  ;;  %v1487_v4 = vadd.f32 -1.0, %v1879_v62 }
 0x136   : > { %v563_v5 = vmul.f32 1.442695, %v537_v63  ;;  %v538_v6 = vmin.f32 %v508_v0, 0.0  ;;  %1735 = vmatprep.mubr.msk.f32.mxu0 %vm843_vm3, %v589_v3  ;;  %vm524_vm2 = vcmp.gt.f32.partialorder %v508_v0, 0.0 }
 0x137   : > { %v590_v7 = vsel %vm520_vm13, %v492_v31, %v1487_v4 }
 0x138   : > { %1884 = vpow2.f32 %v563_v5  ;;  %v565_v8 = vmul.f32 1.442695, %v538_v6  ;;  %1736 = vmatmul.mubr.msk.f32.gmra.mrb[36].mxu0 %vm843_vm3, %v590_v7 }
 0x13a   : > { %v1881_v9 = vpop.eup %1880  ;;  %1886 = vpow2.f32 %v565_v8 }
 0x13b   : > { %v1488_v10 = vadd.f32 -1.0, %v1881_v9 }
 0x13c   : > { %v1883_v11 = vpop.eup %1882 }
 0x13d   : > { %v591_v12 = vsel %vm521_vm14, %v497_v42, %v1488_v10  ;;  %v1489_v33 = vadd.f32 -1.0, %v1883_v11 }
 0x13e   : > { %1738 = vmatprep.mubr.msk.f32.mxu0 %vm843_vm3, %v591_v12 }
 0x13f   : > { %v592_v13 = vsel %vm522_vm15, %v500_v48, %v1489_v33 }
 0x140   : > { %1739 = vmatmul.mubr.msk.f32.gmra.mrb[38].mxu0 %vm843_vm3, %v592_v13 }
 0x142   : > { %v1885_v14 = vpop.eup %1884 }
 0x143   : > { %v1490_v15 = vadd.f32 -1.0, %v1885_v14 }
 0x144   : > { %v1887_v16 = vpop.eup %1886 }
 0x145   : > { %v593_v17 = vsel %vm523_vm1, %v505_v58, %v1490_v15  ;;  %v1491_v18 = vadd.f32 -1.0, %v1887_v16 }
 0x146   : > { %1741 = vmatprep.mubr.msk.f32.mxu0 %vm843_vm3, %v593_v17 }
 0x147   : > { %v594_v20 = vsel %vm524_vm2, %v508_v0, %v1491_v18 }
 0x148   : > { %1742 = vmatmul.mubr.msk.f32.gmra.mrb[40].mxu0 %vm843_vm3, %v594_v20 }
 0x149   : > { %1773 = vmatprep.mubr.msk.f32.mxu0 %vm2011_vm0, %v2010_v1  ;;  %v1687_v1 = vpop.f32.mrb[1].mxu1  ;;  %vm1078_vm0 = vcmask 80896  }
 0x14a   : > { %v2290_v25 = vpop.f32.mrb[2].mxu1 }
 0x14b   : > { %v1688_v26 = vpop.f32.mrb[3].mxu1 }
 0x14c   : > { %v2292_v27 = vpop.f32.mrb[4].mxu1 }
 0x14d   : > { %v1691_v28 = vpop.f32.mrb[5].mxu1 }
 0x14e   : > { %v2294_v29 = vpop.f32.mrb[6].mxu1 }
 0x14f   : > { %v1692_v30 = vpop.f32.mrb[7].mxu1 }
 0x150   : > { %v2296_v31 = vpop.f32.mrb[8].mxu1 }
 0x151   : > { %v1695_v32 = vpop.f32.mrb[9].mxu1 }
 0x152   : > { %v2298_v34 = vpop.f32.mrb[10].mxu1 }
 0x153   : > { %v1696_v35 = vpop.f32.mrb[11].mxu1 }
 0x154   : > { %v2300_v36 = vpop.f32.mrb[12].mxu1 }
 0x155   : > { %v1699_v37 = vpop.f32.mrb[13].mxu1 }
 0x156   : > { %v2302_v38 = vpop.f32.mrb[14].mxu1 }
 0x157   : > { %v1700_v39 = vpop.f32.mrb[15].mxu1 }
 0x158   : > { %v2304_v40 = vpop.f32.mrb[16].mxu1 }
 0x159   : > { %v1703_v41 = vpop.f32.mrb[17].mxu1 }
 0x15a   : > { %v2306_v42 = vpop.f32.mrb[18].mxu1 }
 0x15b   : > { %v1704_v43 = vpop.f32.mrb[19].mxu1 }
 0x15c   : > { %v2308_v44 = vpop.f32.mrb[20].mxu1 }
 0x15d   : > { %v1707_v45 = vpop.f32.mrb[21].mxu1 }
 0x15e   : > { %v2310_v46 = vpop.f32.mrb[22].mxu1 }
 0x15f   : > { %v1708_v47 = vpop.f32.mrb[23].mxu1 }
 0x160   : > { %v2312_v50 = vpop.f32.mrb[24].mxu1 }
 0x161   : > { %v1711_v52 = vpop.f32.mrb[25].mxu1 }
 0x162   : > { %v2314_v53 = vpop.f32.mrb[26].mxu1 }
 0x163   : > { %v1712_v54 = vpop.f32.mrb[27].mxu1 }
 0x1eb   : > { %v1725_v48 = vpop.f32.mrb[28].mxu0 }
 0x1ec   : > { %v952_v49 = vpop.f32.mrb[29].mxu0 }
 0x1ed   : > { %v1021_v51 = vmax.f32 %v952_v49, %v1725_v48 }
 0x1f3   : > { %v1728_v55 = vpop.f32.mrb[30].mxu0 }
 0x1f4   : > { %v962_v56 = vpop.f32.mrb[31].mxu0 }
 0x1f5   : > { %v1022_v57 = vmax.f32 %v1021_v51, %v962_v56 }
 0x1f7   : > { %v1023_v58 = vmax.f32 %v1022_v57, %v1728_v55 }
 0x1fb   : > { %v1731_v59 = vpop.f32.mrb[32].mxu0 }
 0x1fc   : > { %v972_v60 = vpop.f32.mrb[33].mxu0 }
 0x1fd   : > { %v1024_v61 = vmax.f32 %v1023_v58, %v972_v60 }
 0x1ff   : > { %v1025_v62 = vmax.f32 %v1024_v61, %v1731_v59 }
 0x203   : > { %v1734_v63 = vpop.f32.mrb[34].mxu0 }
 0x204   : > { %v982_v0 = vpop.f32.mrb[35].mxu0 }
 0x205   : > { %v1026_v2 = vmax.f32 %v1025_v62, %v982_v0 }
 0x207   : > { %v1027_v3 = vmax.f32 %v1026_v2, %v1734_v63 }
 0x20b   : > { %v1737_v4 = vpop.f32.mrb[36].mxu0 }
 0x20c   : > { %v992_v5 = vpop.f32.mrb[37].mxu0 }
 0x20d   : > { %v1028_v6 = vmax.f32 %v1027_v3, %v992_v5 }
 0x20f   : > { %v1029_v7 = vmax.f32 %v1028_v6, %v1737_v4 }
 0x213   : > { %v1740_v8 = vpop.f32.mrb[38].mxu0 }
 0x214   : > { %v1002_v9 = vpop.f32.mrb[39].mxu0 }
 0x215   : > { %v1030_v10 = vmax.f32 %v1029_v7, %v1002_v9 }
 0x217   : > { %v1031_v11 = vmax.f32 %v1030_v10, %v1740_v8 }
 0x21b   : > { %v1743_v12 = vpop.f32.mrb[40].mxu0 }
 0x21c   : > { %v1012_v33 = vpop.f32.mrb[41].mxu0 }
 0x21d   : > { %v1032_v13 = vmax.f32 %v1031_v11, %v1012_v33 }
 0x21f   : > { %v1033_v14 = vmax.f32 %v1032_v13, %v1743_v12 }
 0x221   : > { %v1034_v15 = vsub.f32 %v952_v49, %v1033_v14  ;;  %v1035_v16 = vsub.f32 %v1725_v48, %v1033_v14  ;;  %v1036_v17 = vsub.f32 %v962_v56, %v1033_v14  ;;  %v1037_v18 = vsub.f32 %v1728_v55, %v1033_v14 }
 0x222   : > { %v1038_v20 = vsub.f32 %v972_v60, %v1033_v14  ;;  %v1039_v21 = vsub.f32 %v1731_v59, %v1033_v14  ;;  %v1040_v19 = vsub.f32 %v982_v0, %v1033_v14  ;;  %v1041_v22 = vsub.f32 %v1734_v63, %v1033_v14 }
 0x223   : > { %v1042_v23 = vsub.f32 %v992_v5, %v1033_v14  ;;  %v1043_v1 = vsub.f32 %v1737_v4, %v1033_v14  ;;  %v1044_v26 = vsub.f32 %v1002_v9, %v1033_v14  ;;  %v1045_v28 = vsub.f32 %v1740_v8, %v1033_v14 }
 0x224   : > { %v1046_v30 = vsub.f32 %v1012_v33, %v1033_v14  ;;  %v1047_v32 = vsub.f32 %v1743_v12, %v1033_v14  ;;  %v1048_v35 = vmul.f32 1.442695, %v1034_v15  ;;  %v1050_v37 = vmul.f32 1.442695, %v1035_v16 }
 0x225   : > { %v1052_v39 = vmul.f32 1.442695, %v1036_v17  ;;  %v1054_v41 = vmul.f32 1.442695, %v1037_v18  ;;  %v1056_v43 = vmul.f32 1.442695, %v1038_v20 }
 0x226   : > { %1888 = vpow2.f32 %v1048_v35  ;;  %v1058_v45 = vmul.f32 1.442695, %v1039_v21  ;;  %v1060_v47 = vmul.f32 1.442695, %v1040_v19  ;;  %v1062_v48 = vmul.f32 1.442695, %v1041_v22 }
 0x227   : > { %1890 = vpow2.f32 %v1050_v37  ;;  %v1064_v51 = vmul.f32 1.442695, %v1042_v23  ;;  %v1066_v56 = vmul.f32 1.442695, %v1043_v1  ;;  %v1068_v57 = vmul.f32 1.442695, %v1044_v26 }
 0x228   : > { %1892 = vpow2.f32 %v1052_v39  ;;  %v1070_v62 = vmul.f32 1.442695, %v1045_v28  ;;  %v1072_v63 = vmul.f32 1.442695, %v1046_v30  ;;  %v1074_v5 = vmul.f32 1.442695, %v1047_v32 }
 0x229   : > { %1894 = vpow2.f32 %v1054_v41  ;;  %v1492_v21 = vld [vmem:[%s2465_s4] ss:$0 sm:$0xff] }
 0x22a   : > { %1896 = vpow2.f32 %v1056_v43  ;;  %v703_v19 = vadd.f32 %v1492_v21, %v2290_v25  ;;  %v2336_v22 = vadd.f32 %v1492_v21, %v2288_v24  ;;  %v2339_v1 = vadd.f32 %v1492_v21, %v2294_v29 }
 0x22b   : > { %1898 = vpow2.f32 %v1058_v45  ;;  %v2343_v28 = vadd.f32 %v1492_v21, %v2292_v27  ;;  %v2347_v35 = vadd.f32 %v1492_v21, %v2298_v34  ;;  %v2351_v24 = vadd.f32 %v1492_v21, %v2296_v31 }
 0x22c   : > { %1900 = vpow2.f32 %v1060_v47  ;;  %v769_v23 = vmin.f32 %v703_v19, 0.0  ;;  %v768_v26 = vmin.f32 %v2336_v22, 0.0  ;;  %v771_v32 = vmin.f32 %v2339_v1, 0.0 }
 0x22d   : > { %1902 = vpow2.f32 %v1062_v48  ;;  %v770_v25 = vmin.f32 %v2343_v28, 0.0  ;;  %v773_v39 = vmin.f32 %v2347_v35, 0.0  ;;  %v2355_v41 = vadd.f32 %v1492_v21, %v2302_v38 }
 0x22e   : > { %1904 = vpow2.f32 %v1064_v51  ;;  %v784_v30 = vmul.f32 1.442695, %v769_v23  ;;  %v782_v37 = vmul.f32 1.442695, %v768_v26  ;;  %v788_v29 = vmul.f32 1.442695, %v771_v32 }
 0x22f   : > { %1906 = vpow2.f32 %v1066_v56  ;;  %v786_v27 = vmul.f32 1.442695, %v770_v25  ;;  %v772_v43 = vmin.f32 %v2351_v24, 0.0  ;;  %v2359_v34 = vadd.f32 %v1492_v21, %v2300_v36 }
 0x230   : > { %v1889_v49 = vpop.eup %1888  ;;  %1908 = vpow2.f32 %v1068_v57  ;;  %v792_v45 = vmul.f32 1.442695, %v773_v39  ;;  %v775_v47 = vmin.f32 %v2355_v41, 0.0  ;;  %v2363_v31 = vadd.f32 %v1492_v21, %v2306_v42 }
 0x231   : > { %v1891_v52 = vpop.eup %1890  ;;  %1748 = vmatprep.mubr.msk.f32.mxu1 %vm1078_vm0, %v1889_v49  ;;  %1910 = vpow2.f32 %v1070_v62  ;;  %v790_v48 = vmul.f32 1.442695, %v772_v43  ;;  %v2367_v38 = vadd.f32 %v1492_v21, %v2304_v40  ;;  %v2370_v51 = vadd.f32 %v1492_v21, %v2308_v44 }
 0x232   : > { %v1893_v54 = vpop.eup %1892  ;;  %v1274_v55 = vadd.f32 %v1891_v52, %v1889_v49  ;;  %1749 = vmatmul.mubr.msk.f32.vlgmr.msra.gmra.mrb[28].mxu1 %vm1078_vm0, %v1891_v52  ;;  %1912 = vpow2.f32 %v1072_v63  ;;  %v774_v49 = vmin.f32 %v2359_v34, 0.0  ;;  %v796_v36 = vmul.f32 1.442695, %v775_v47 }
 0x233   : > { %1751 = vmatprep.mubr.msk.f32.mxu1 %vm1078_vm0, %v1893_v54  ;;  %v1895_v59 = vpop.eup %1894  ;;  %1914 = vpow2.f32 %v1074_v5  ;;  %v777_v52 = vmin.f32 %v2363_v31, 0.0  ;;  %vm755_vm7 = vcmp.gt.f32.partialorder %v703_v19, 0.0  ;;  %vm754_vm8 = vcmp.gt.f32.partialorder %v2336_v22, 0.0 }
 0x234   : > { %v1276_v58 = vadd.f32 %v1893_v54, %v1274_v55  ;;  %v1897_v60 = vpop.eup %1896  ;;  %1916 = vpow2.f32 %v784_v30  ;;  %v2374_v54 = vadd.f32 %v1492_v21, %v2310_v46  ;;  %v794_v42 = vmul.f32 1.442695, %v774_v49 }
 0x235   : > { %v1899_v2 = vpop.eup %1898  ;;  %1918 = vpow2.f32 %v782_v37  ;;  %v776_v55 = vmin.f32 %v2367_v38, 0.0  ;;  %v800_v40 = vmul.f32 1.442695, %v777_v52  ;;  %v2383_v46 = vadd.f32 %v1492_v21, %v2312_v50 }
 0x236   : > { %v1278_v61 = vadd.f32 %v1895_v59, %v1276_v58  ;;  %1752 = vmatmul.mubr.msk.f32.gmra.mrb[30].mxu1 %vm1078_vm0, %v1895_v59  ;;  %v1901_v3 = vpop.eup %1900  ;;  %1920 = vpow2.f32 %v788_v29  ;;  %v778_v58 = vmin.f32 %v2370_v51, 0.0  ;;  %v779_v44 = vmin.f32 %v2374_v54, 0.0 }
 0x237   : > { %1754 = vmatprep.mubr.msk.f32.mxu1 %vm1078_vm0, %v1897_v60  ;;  %v1903_v7 = vpop.eup %1902  ;;  %1922 = vpow2.f32 %v786_v27  ;;  %v2380_v59 = vadd.f32 %v1492_v21, %v2314_v53  ;;  %v780_v53 = vmin.f32 %v2383_v46, 0.0  ;;  %vm757_vm9 = vcmp.gt.f32.partialorder %v2339_v1, 0.0 }
 0x238   : > { %v1280_v0 = vadd.f32 %v1897_v60, %v1278_v61  ;;  %v1905_v8 = vpop.eup %1904  ;;  %1924 = vpow2.f32 %v792_v45  ;;  %v798_v60 = vmul.f32 1.442695, %v776_v55  ;;  %vm756_vm10 = vcmp.gt.f32.partialorder %v2343_v28, 0.0 }
 0x239   : > { %v1907_v11 = vpop.eup %1906  ;;  %1926 = vpow2.f32 %v790_v48  ;;  %vm759_vm11 = vcmp.gt.f32.partialorder %v2347_v35, 0.0  ;;  %vm758_vm12 = vcmp.gt.f32.partialorder %v2351_v24, 0.0  ;;  %vm761_vm13 = vcmp.gt.f32.partialorder %v2355_v41, 0.0 }
 0x23a   : > { %v1282_v4 = vadd.f32 %v1899_v2, %v1280_v0  ;;  %1755 = vmatmul.mubr.msk.f32.gmra.mrb[32].mxu1 %vm1078_vm0, %v1899_v2  ;;  %v1909_v12 = vpop.eup %1908  ;;  %1928 = vpow2.f32 %v796_v36  ;;  %v802_v2 = vmul.f32 1.442695, %v778_v58  ;;  %vm760_vm14 = vcmp.gt.f32.partialorder %v2359_v34, 0.0 }
 0x23b   : > { %1757 = vmatprep.mubr.msk.f32.mxu1 %vm1078_vm0, %v1901_v3  ;;  %v1911_v14 = vpop.eup %1910  ;;  %1930 = vpow2.f32 %v794_v42  ;;  %vm763_vm15 = vcmp.gt.f32.partialorder %v2363_v31, 0.0  ;;  %vm762_vm1 = vcmp.gt.f32.partialorder %v2367_v38, 0.0  ;;  %vm765_vm2 = vcmp.gt.f32.partialorder %v2374_v54, 0.0 }
 0x23c   : > { %v1284_v6 = vadd.f32 %v1901_v3, %v1282_v4  ;;  %v1913_v15 = vpop.eup %1912  ;;  %1932 = vpow2.f32 %v800_v40  ;;  %v804_v3 = vmul.f32 1.442695, %v779_v44  ;;  %v781_v4 = vmin.f32 %v2380_v59, 0.0 }
 0x23d   : > { %v1915_v18 = vpop.eup %1914  ;;  %1934 = vpow2.f32 %v798_v60  ;;  %vm764_vm4 = vcmp.gt.f32.partialorder %v2370_v51, 0.0  ;;  %vm767_vm5 = vcmp.gt.f32.partialorder %v2380_v59, 0.0  ;;  %vm766_vm6 = vcmp.gt.f32.partialorder %v2383_v46, 0.0 }
 0x23e   : > { %v1286_v9 = vadd.f32 %v1903_v7, %v1284_v6  ;;  %1758 = vmatmul.mubr.msk.f32.gmra.mrb[34].mxu1 %vm1078_vm0, %v1903_v7  ;;  %v1917_v56 = vpop.eup %1916  ;;  %1936 = vpow2.f32 %v802_v2 }
 0x23f   : > { %1760 = vmatprep.mubr.msk.f32.mxu1 %vm1078_vm0, %v1905_v8  ;;  %v1919_v57 = vpop.eup %1918  ;;  %v1509_v61 = vadd.f32 -1.0, %v1917_v56  ;;  %1938 = vpow2.f32 %v804_v3 }
 0x240   : > { %v1288_v10 = vadd.f32 %v1905_v8, %v1286_v9  ;;  %v1921_v62 = vpop.eup %1920  ;;  %v1508_v63 = vadd.f32 -1.0, %v1919_v57 }
 0x241   : > { %v1923_v0 = vpop.eup %1922  ;;  %v825_v5 = vsel %vm755_vm7, %v703_v19, %v1509_v61  ;;  %v1511_v7 = vadd.f32 -1.0, %v1921_v62 }
 0x242   : > { %v1290_v33 = vadd.f32 %v1907_v11, %v1288_v10  ;;  %1761 = vmatmul.mubr.msk.f32.gmra.mrb[36].mxu1 %vm1078_vm0, %v1907_v11  ;;  %v1925_v50 = vpop.eup %1924  ;;  %v824_v9 = vsel %vm754_vm8, %v2336_v22, %v1508_v63  ;;  %v1510_v11 = vadd.f32 -1.0, %v1923_v0 }
 0x243   : > { %1763 = vmatprep.mubr.msk.f32.mxu1 %vm1078_vm0, %v1909_v12 }
 0x244   : > { %v1292_v13 = vadd.f32 %v1909_v12, %v1290_v33  ;;  %v1927_v12 = vpop.eup %1926  ;;  %v826_v19 = vsel %vm756_vm10, %v2343_v28, %v1510_v11 }
 0x245   : > { %v1512_v23 = vadd.f32 -1.0, %v1927_v12 }
 0x246   : > { %v1294_v16 = vadd.f32 %v1911_v14, %v1292_v13  ;;  %1764 = vmatmul.mubr.msk.f32.gmra.mrb[38].mxu1 %vm1078_vm0, %v1911_v14  ;;  %v808_v13 = vmul.f32 1.442695, %v781_v4  ;;  %v806_v14 = vmul.f32 1.442695, %v780_v53 }
 0x247   : > { %1766 = vmatprep.mubr.msk.f32.mxu1 %vm1078_vm0, %v1913_v15  ;;  %v828_v27 = vsel %vm758_vm12, %v2351_v24, %v1512_v23 }
 0x248   : > { %v1296_v17 = vadd.f32 %v1913_v15, %v1294_v16  ;;  %v827_v16 = vsel %vm757_vm9, %v2339_v1, %v1511_v7  ;;  %1940 = vpow2.f32 %v808_v13 }
 0x249   : > { %1942 = vpow2.f32 %v806_v14 }
 0x24a   : > { %v1298_v20 = vadd.f32 %v1915_v18, %v1296_v17  ;;  %1767 = vmatmul.mubr.msk.f32.gmra.mrb[40].mxu1 %vm1078_vm0, %v1915_v18  ;;  %v1513_v18 = vadd.f32 -1.0, %v1925_v50 }
 0x24c   : > { %1774 = vmatmul.mubr.msk.f32.vlgmr.msra.gmra.mrb[42].mxu0 %vm1078_vm0, %v1298_v20  ;;  %v1929_v20 = vpop.eup %1928  ;;  %v829_v37 = vsel %vm759_vm11, %v2347_v35, %v1513_v18 }
 0x24d   : > { %v1931_v26 = vpop.eup %1930  ;;  %v1515_v25 = vadd.f32 -1.0, %v1929_v20 }
 0x24e   : > { %v1933_v29 = vpop.eup %1932  ;;  %v1514_v43 = vadd.f32 -1.0, %v1931_v26 }
 0x24f   : > { %v1935_v45 = vpop.eup %1934  ;;  %v831_v52 = vsel %vm761_vm13, %v2355_v41, %v1515_v25  ;;  %v1517_v42 = vadd.f32 -1.0, %v1933_v29 }
 0x250   : > { %v1937_v49 = vpop.eup %1936  ;;  %v830_v57 = vsel %vm760_vm14, %v2359_v34, %v1514_v43  ;;  %v1516_v58 = vadd.f32 -1.0, %v1935_v45 }
 0x251   : > { %v1939_v55 = vpop.eup %1938  ;;  %v833_v61 = vsel %vm763_vm15, %v2363_v31, %v1517_v42  ;;  %v1518_v34 = vadd.f32 -1.0, %v1937_v49 }
 0x252   : > { %v1519_v63 = vadd.f32 -1.0, %v1939_v55  ;;  %v1941_v41 = vpop.eup %1940  ;;  %v832_v2 = vsel %vm762_vm1, %v2367_v38, %v1516_v58 }
 0x253   : > { %v1943_v4 = vpop.eup %1942  ;;  %v1521_v31 = vadd.f32 -1.0, %v1941_v41 }
 0x254   : > { %v835_v7 = vsel %vm765_vm2, %v2374_v54, %v1519_v63  ;;  %v1520_v38 = vadd.f32 -1.0, %v1943_v4 }
 0x255   : > { %v837_v13 = vsel %vm767_vm5, %v2380_v59, %v1521_v31 }
 0x305   : > { %v1750_v6 = vpop.f32.mrb[28].mxu1 }
 0x306   : > { %v1261_v8 = vmul.f32 %v1750_v6, %v825_v5  ;;  %v1191_v10 = vpop.f32.mrb[29].mxu1 }
 0x307   : > { %v1260_v33 = vmul.f32 %v1191_v10, %v824_v9  ;;  %v834_v9 = vsel %vm764_vm4, %v2370_v51, %v1518_v34 }
 0x309   : > { %v1275_v15 = vadd.f32 %v1261_v8, %v1260_v33  ;;  %v1753_v17 = vpop.f32.mrb[30].mxu1 }
 0x30a   : > { %v1263_v21 = vmul.f32 %v1753_v17, %v827_v16  ;;  %v1201_v22 = vpop.f32.mrb[31].mxu1 }
 0x30b   : > { %v1262_v30 = vmul.f32 %v1201_v22, %v826_v19 }
 0x30d   : > { %v1277_v32 = vadd.f32 %v1275_v15, %v1262_v30  ;;  %v1756_v1 = vpop.f32.mrb[32].mxu1  ;;  %v836_v15 = vsel %vm766_vm6, %v2383_v46, %v1520_v38 }
 0x30e   : > { %v1265_v39 = vmul.f32 %v1756_v1, %v829_v37  ;;  %v1211_v28 = vpop.f32.mrb[33].mxu1 }
 0x30f   : > { %v1264_v47 = vmul.f32 %v1211_v28, %v828_v27  ;;  %v1279_v48 = vadd.f32 %v1277_v32, %v1263_v21 }
 0x311   : > { %v1281_v36 = vadd.f32 %v1279_v48, %v1264_v47  ;;  %v1759_v35 = vpop.f32.mrb[34].mxu1 }
 0x312   : > { %v1267_v56 = vmul.f32 %v1759_v35, %v831_v52  ;;  %v1221_v24 = vpop.f32.mrb[35].mxu1 }
 0x313   : > { %v1266_v40 = vmul.f32 %v1221_v24, %v830_v57  ;;  %v1283_v44 = vadd.f32 %v1281_v36, %v1265_v39 }
 0x315   : > { %v1285_v60 = vadd.f32 %v1283_v44, %v1266_v40  ;;  %v1762_v62 = vpop.f32.mrb[36].mxu1 }
 0x316   : > { %v1269_v0 = vmul.f32 %v1762_v62, %v833_v61  ;;  %v1231_v3 = vpop.f32.mrb[37].mxu1 }
 0x317   : > { %v1268_v53 = vmul.f32 %v1231_v3, %v832_v2  ;;  %v1287_v5 = vadd.f32 %v1285_v60, %v1267_v56 }
 0x319   : > { %v1289_v6 = vadd.f32 %v1287_v5, %v1268_v53  ;;  %v1765_v50 = vpop.f32.mrb[38].mxu1 }
 0x31a   : > { %v1271_v8 = vmul.f32 %v1765_v50, %v835_v7  ;;  %v1241_v10 = vpop.f32.mrb[39].mxu1 }
 0x31b   : > { %v1270_v11 = vmul.f32 %v1241_v10, %v834_v9  ;;  %v1291_v12 = vadd.f32 %v1289_v6, %v1269_v0 }
 0x31d   : > { %v1293_v33 = vadd.f32 %v1291_v12, %v1270_v11  ;;  %v1768_v14 = vpop.f32.mrb[40].mxu1 }
 0x31e   : > { %v1273_v54 = vmul.f32 %v1768_v14, %v837_v13  ;;  %v1251_v16 = vpop.f32.mrb[41].mxu1 }
 0x31f   : > { %v1272_v17 = vmul.f32 %v1251_v16, %v836_v15  ;;  %v1295_v51 = vadd.f32 %v1293_v33, %v1271_v8  ;;  %v1369_v18 = vpop.f32.mrb[42].mxu0 }
 0x320   : > { %1944 = vrcp.f32 %v1369_v18  ;;  %v1775_v20 = vpop.f32.mrb[43].mxu0 }
 0x321   : > { %v1297_v21 = vadd.f32 %v1295_v51, %v1272_v17 }
 0x323   : > { %v1299_v19 = vadd.f32 %v1297_v21, %v1273_v54 }
 0x32a   : > { %v1945_v22 = vpop.eup %1944 }
 0x32b   : > { %v1374_v59 = vmul.f32 %v1945_v22, %v1299_v19 }
 0x32d   : > { %1375 = vst.msk [vmem:[%s272_s16] sm:$0xff] %vm843_vm3, %v1374_v59 }
 0x32e   : > { %1959 = shalt.err (!%p1956_p3)
}
 0x32f   : > { %s1960_s29 = scalar_lea.hbm %s2418_s19, 128  ;;  %s1964_s14 = scalar_lea.hbm %s2468_s7, 256 }
 0x330   : > { %p1961_p4 = scmp.ne.s32.totalorder %s2418_s19, %s1960_s29  ;;  %p1965_p9 = scmp.lt.u32.totalorder %s2418_s19, %s2468_s7 }
 0x331   : > { %p1966_p10 = scmp.lt.u32.totalorder %s1964_s14, %s1960_s29  ;;  %p1968_p12 = scmp.lt.u32.totalorder %s1960_s29, %s2418_s19 }
 0x332   : > { %p1962_p7 = pnand %p1961_p4, %p2093_p5 }
 0x333   : > { %p1967_p11 = por %p1966_p10, %p1965_p9 }
 0x334   : > { %p1963_p8 = pneg %p1962_p7 }
 0x335   : > { %p1969_p13 = por %p1968_p12, %p1967_p11 }
 0x337   : > { %p1970_p0 = pnand %p1969_p13, %p1963_p8 }
 0x339   : > { %1973 = shalt.err (!%p1970_p0)
}
 0x33a   : > { %1794 = dma.vmem_to_hbm [thread:$0]  (%p2093_p5), %s2420_s8, 128, %s2418_s19, %s1377_s20  }
 0x33b PF: > { %p1800_p1 = scmp.ge.s32.totalorder %s2008_s27, 2  ;;  %s1402_s17 = sand.u32 1, %s1996_s24  }
 0x33c   : > { %s1403_s18 = scalar_lea.sflag [#allocation3], %s1402_s17 }
 0x33d   : > { %p1797_p2 = pnand %p1800_p1, %p2097_p6 }
 0x33f   : > { %1991 = dma.done.wait (!%p1797_p2), %s1403_s18, 128  }
 0x340   : > { %1993 = vsyncadd (!%p1797_p2), %s1403_s18, 4294967168  ;;  %p17_p3 = scmp.ge.s32.totalorder %s2080_s30, 4   ;;  %s2471_s24 = smov %s2000_s25 }
 0x341   : > { %s2472_s25 = smov %s2004_s26  ;;  %s2473_s26 = smov %s2091_s10 }
 0x342   : > { %s2474_s27 = smov %s2080_s30  ;;  %19 = sbr.rel (!%p17_p3) target bundleno = 3 (0x3), region = 83 }
 0x349   :  { %1408 = vsyncpa [#allocation3], 1 }
 0x34a   :  { %1410 = vsyncpa [#allocation3 + $0x1], 1 }

</bundles_post_ra>
